<compile_context>
chip_gen: v5e
topology: v5e:2x2
jax: 0.10.0
libtpu: 0.0.40
codegen_flags: <defaults>
</compile_context>

<pallas_src>
import functools
import re

import jax
import jax.numpy as jnp
from jax.experimental import pallas as pl
from jax.experimental.pallas import tpu as pltpu


def _round_up(n, m):
    return ((n + m - 1) // m) * m


def _tpu_generation():
    """Best-effort TPU generation (perf tuning only; math is gen-independent)."""
    try:
        kind = jax.devices()[0].device_kind.lower()
    except Exception:
        return 6
    m = re.search(r"v(\d+)", kind)
    return int(m.group(1)) if m else 6


def mlp_kernel(x_ref,
               w1_ref, b1_ref,
               w2_ref, b2_ref,
               w3_ref, b3_ref,
               w4_ref, b4_ref,
               o_ref,
               *, epilogue_dtype):
    """One batch tile of the 4-layer MLP (weights VMEM-resident across grid)."""

    def layer(h, w_ref, b_ref, relu):
        # MXU dot in the weights' storage dtype (bf16), f32 accumulation.
        acc = jnp.dot(h.astype(w_ref.dtype), w_ref[...],
                      preferred_element_type=jnp.float32)
        # Bias + ReLU epilogue:
        #   bf16 on v6e/v7x (bf16 VALU; halves vreg pressure; next dot is bf16)
        #   f32 on v5e (no bf16 VPU path).
        acc = acc.astype(epilogue_dtype) + b_ref[...]
        if relu:
            acc = jnp.maximum(acc, 0.0)
        return acc

    h = x_ref[...]                          # already bf16 (cast in the wrapper)
    h = layer(h, w1_ref, b1_ref, True)
    h = layer(h, w2_ref, b2_ref, True)
    h = layer(h, w3_ref, b3_ref, True)
    h = layer(h, w4_ref, b4_ref, False)
    o_ref[...] = h.astype(o_ref.dtype)      # lane-dense bf16 store (unmasked vst)


def mlp_forward(x, params, *, block_batch=None, lane=128, batch_align=16,
                out_store_dtype=jnp.bfloat16):
    """x: (B, in_dim) f32. params: [(W, b)] * 4 with W: (in, out) bf16, b: (1, out) f32."""
    (w1, b1), (w2, b2), (w3, b3), (w4, b4) = params
    B, in_dim = x.shape
    h1, h2, h3 = w1.shape[1], w2.shape[1], w3.shape[1]
    out_dim = w4.shape[1]

    gen = _tpu_generation()
    if block_batch is None:
        # v5e (4x128^2 MXU): M=128 already fills it.  v6e/v7x (2x256^2): M=256.
        block_batch = 128 if gen <= 5 else 256
    epilogue_dtype = jnp.float32 if gen <= 5 else jnp.bfloat16

    # --- Activations in bf16: halves x DMA bytes, no per-tile cast in layer 1.
    x = x.astype(w1.dtype)

    # --- Lane-dense output: pad the last layer's out-features to a 128 multiple.
    out_pad = _round_up(out_dim, lane)
    if out_pad != out_dim:
        w4 = jnp.pad(w4, ((0, 0), (0, out_pad - out_dim)))
        b4 = jnp.pad(b4, ((0, 0), (0, out_pad - out_dim)))

    # --- Biases in the epilogue dtype (cast once here, never per tile).
    b1, b2, b3, b4 = (b.astype(epilogue_dtype) for b in (b1, b2, b3, b4))

    # --- Batch tile selection.
    if B >= 2 * block_batch:
        tb = block_batch
    elif gen >= 7 and B >= 2 * batch_align:
        # v7x has 2 TensorCores: guarantee >= 2 batch tiles so the "parallel"
        # grid axis actually feeds both cores.
        tb = min(block_batch, _round_up(pl.cdiv(B, 2), batch_align))
    else:
        tb = min(block_batch, _round_up(B, batch_align))
    B_pad = _round_up(B, tb)
    if B_pad != B:
        x = jnp.pad(x, ((0, B_pad - B), (0, 0)))
    grid = (B_pad // tb,)

    # --- Resident weights: constant block index -> DMA'd once, stay in VMEM.
    #     Single-buffer them once they are big enough for double-buffering to
    #     hurt (matters on v7x's 64 MiB VMEM when hidden_dim scales up).
    weight_bytes = sum(int(a.size) * a.dtype.itemsize
                       for a in (w1, b1, w2, b2, w3, b3, w4, b4))
    single_buffer_weights = weight_bytes > (4 << 20)

    def resident(arr):
        kwargs = {}
        if single_buffer_weights:
            kwargs["pipeline_mode"] = pl.Buffered(1)
        return pl.BlockSpec(arr.shape, lambda i: (0,) * arr.ndim, **kwargs)

    # --- Scoped-VMEM budget: only set explicitly when we get close to the
    #     default limit (16 MiB on v5e / 32 MiB on v6e/v7x).
    act_bytes = 2 * tb * (in_dim + out_pad) * x.dtype.itemsize
    inter_bytes = 3 * tb * max(h1, h2, h3) * jnp.dtype(epilogue_dtype).itemsize
    vmem_estimate = ((1 if single_buffer_weights else 2) * weight_bytes
                     + act_bytes + inter_bytes)
    compiler_kwargs = dict(dimension_semantics=("parallel",))
    if vmem_estimate > (12 << 20):
        compiler_kwargs["vmem_limit_bytes"] = min(
            int(1.5 * vmem_estimate) + (2 << 20), 100 << 20)

    # --- Advisory cost hint for the XLA scheduler.
    flops = 2 * B_pad * (in_dim * h1 + h1 * h2 + h2 * h3 + h3 * out_pad)
    bytes_accessed = (int(x.size) * x.dtype.itemsize
                      + weight_bytes
                      + B_pad * out_pad * jnp.dtype(out_store_dtype).itemsize)
    cost = pl.CostEstimate(flops=flops, transcendentals=0,
                           bytes_accessed=bytes_accessed)

    out = pl.pallas_call(
        functools.partial(mlp_kernel, epilogue_dtype=epilogue_dtype),
        out_shape=jax.ShapeDtypeStruct((B_pad, out_pad), out_store_dtype),
        grid=grid,
        in_specs=[
            pl.BlockSpec((tb, in_dim), lambda i: (i, 0)),
            resident(w1), resident(b1),
            resident(w2), resident(b2),
            resident(w3), resident(b3),
            resident(w4), resident(b4),
        ],
        out_specs=pl.BlockSpec((tb, out_pad), lambda i: (i, 0)),
        compiler_params=pltpu.CompilerParams(**compiler_kwargs),
        cost_estimate=cost,
    )(x, w1, b1, w2, b2, w3, b3, w4, b4)

    # Slice off batch/lane padding and upcast to the module's f32 output.
    return out[:B, :out_dim].astype(jnp.float32)


def init_linear(key, in_dim, out_dim, w_dtype=jnp.bfloat16):
    """PyTorch-style init: U(-1/sqrt(in_dim), 1/sqrt(in_dim)).

    Weights stored (in, out) in bf16 (halves weight DMA, feeds MXU bf16 path);
    biases kept f32 (cast to the epilogue dtype inside the wrapper)."""
    kw, kb = jax.random.split(key)
    bound = 1.0 / (in_dim ** 0.5)
    w = jax.random.uniform(kw, (in_dim, out_dim), jnp.float32, -bound, bound)
    b = jax.random.uniform(kb, (1, out_dim), jnp.float32, -bound, bound)
    return w.astype(w_dtype), b


def mlp_reference(x, params, epilogue_dtype, out_store_dtype=jnp.bfloat16):
    """Pure-JAX reference performing the same casts / f32 accumulation."""
    h = x.astype(params[0][0].dtype)
    for i, (w, b) in enumerate(params):
        acc = jnp.dot(h.astype(w.dtype), w, preferred_element_type=jnp.float32)
        acc = acc.astype(epilogue_dtype) + b.astype(epilogue_dtype)
        if i < 3:
            acc = jnp.maximum(acc, 0.0)
        h = acc
    return h.astype(out_store_dtype).astype(jnp.float32)


if __name__ == "__main__":
    # MLP(in_dim=32, out_dim=8, hidden_dim=256), small batch.
    batch, in_dim, hidden_dim, out_dim = 8, 32, 256, 8

    root = jax.random.PRNGKey(0)
    kx, k1, k2, k3, k4 = jax.random.split(root, 5)

    x = jax.random.normal(kx, (batch, in_dim), jnp.float32)
    params = [
        init_linear(k1, in_dim, hidden_dim),
        init_linear(k2, hidden_dim, hidden_dim),
        init_linear(k3, hidden_dim, hidden_dim),
        init_linear(k4, hidden_dim, out_dim),
    ]

    fwd = jax.jit(mlp_forward)
    out = fwd(x, params)
    jax.block_until_ready(out)

    epilogue_dtype = jnp.float32 if _tpu_generation() <= 5 else jnp.bfloat16
    ref = mlp_reference(x, params, epilogue_dtype)

    assert out.shape == (batch, out_dim)
    assert jnp.allclose(out, ref, atol=2e-2, rtol=2e-2), \
        float(jnp.max(jnp.abs(out - ref)))

    print("KERNEL_OK")
</pallas_src>

<mosaic_0001>
module attributes {stable_mosaic.version = 11 : i64} {
  func.func @mlp_kernel(%arg0: i32, %arg1: memref<16x32xbf16, #tpu.memory_space<vmem>>, %arg2: memref<32x256xbf16, #tpu.memory_space<vmem>>, %arg3: memref<1x256xbf16, #tpu.memory_space<vmem>>, %arg4: memref<256x256xbf16, #tpu.memory_space<vmem>>, %arg5: memref<1x256xbf16, #tpu.memory_space<vmem>>, %arg6: memref<256x256xbf16, #tpu.memory_space<vmem>>, %arg7: memref<1x256xbf16, #tpu.memory_space<vmem>>, %arg8: memref<256x128xbf16, #tpu.memory_space<vmem>>, %arg9: memref<1x128xbf16, #tpu.memory_space<vmem>>, %arg10: memref<16x128xbf16, #tpu.memory_space<vmem>>) attributes {dimension_semantics = [#tpu.dimension_semantics<parallel>], iteration_bounds = array<i64: 1>, scalar_prefetch = 0 : i64, scratch_operands = 0 : i64, tpu.core_type = #tpu.core_type<tc>, window_params = [{transform_indices = @transform_0, window_bounds = array<i64: 16, 32>}, {pipeline_mode = #tpu.pipeline_mode<synchronous>, transform_indices = @transform_1, window_bounds = array<i64: 32, 256>}, {pipeline_mode = #tpu.pipeline_mode<synchronous>, transform_indices = @transform_2, window_bounds = array<i64: 1, 256>}, {pipeline_mode = #tpu.pipeline_mode<synchronous>, transform_indices = @transform_3, window_bounds = array<i64: 256, 256>}, {pipeline_mode = #tpu.pipeline_mode<synchronous>, transform_indices = @transform_4, window_bounds = array<i64: 1, 256>}, {pipeline_mode = #tpu.pipeline_mode<synchronous>, transform_indices = @transform_5, window_bounds = array<i64: 256, 256>}, {pipeline_mode = #tpu.pipeline_mode<synchronous>, transform_indices = @transform_6, window_bounds = array<i64: 1, 256>}, {pipeline_mode = #tpu.pipeline_mode<synchronous>, transform_indices = @transform_7, window_bounds = array<i64: 256, 128>}, {pipeline_mode = #tpu.pipeline_mode<synchronous>, transform_indices = @transform_8, window_bounds = array<i64: 1, 128>}, {transform_indices = @transform_9, window_bounds = array<i64: 16, 128>}]} {
    %c0 = arith.constant 0 : index
    %c0_0 = arith.constant 0 : index
    %0 = vector.load %arg1[%c0, %c0_0] : memref<16x32xbf16, #tpu.memory_space<vmem>>, vector<16x32xbf16>
    %c0_1 = arith.constant 0 : index
    %c0_2 = arith.constant 0 : index
    %1 = vector.load %arg2[%c0_1, %c0_2] : memref<32x256xbf16, #tpu.memory_space<vmem>>, vector<32x256xbf16>
    %cst = arith.constant dense<0.000000e+00> : vector<16x256xf32>
    %2 = tpu.matmul %0, %1, %cst {dimension_numbers = #tpu.dot_dimension_numbers<[1], [0], [0], [1], [0, 0, 1, 1], [], []>} : vector<16x32xbf16>, vector<32x256xbf16>, vector<16x256xf32> -> vector<16x256xf32>
    %3 = arith.truncf %2 : vector<16x256xf32> to vector<16x256xbf16>
    %c0_3 = arith.constant 0 : index
    %c0_4 = arith.constant 0 : index
    %4 = vector.load %arg3[%c0_3, %c0_4] : memref<1x256xbf16, #tpu.memory_space<vmem>>, vector<1x256xbf16>
    %5 = vector.broadcast %4 : vector<1x256xbf16> to vector<16x256xbf16>
    %6 = arith.addf %3, %5 : vector<16x256xbf16>
    %cst_5 = arith.constant 0.000000e+00 : bf16
    %7 = vector.broadcast %cst_5 : bf16 to vector<16x256xbf16>
    %8 = arith.maximumf %6, %7 : vector<16x256xbf16>
    %c0_6 = arith.constant 0 : index
    %c0_7 = arith.constant 0 : index
    %9 = vector.load %arg4[%c0_6, %c0_7] : memref<256x256xbf16, #tpu.memory_space<vmem>>, vector<256x256xbf16>
    %cst_8 = arith.constant dense<0.000000e+00> : vector<16x256xf32>
    %10 = tpu.matmul %8, %9, %cst_8 {dimension_numbers = #tpu.dot_dimension_numbers<[1], [0], [0], [1], [0, 0, 1, 1], [], []>} : vector<16x256xbf16>, vector<256x256xbf16>, vector<16x256xf32> -> vector<16x256xf32>
    %11 = arith.truncf %10 : vector<16x256xf32> to vector<16x256xbf16>
    %c0_9 = arith.constant 0 : index
    %c0_10 = arith.constant 0 : index
    %12 = vector.load %arg5[%c0_9, %c0_10] : memref<1x256xbf16, #tpu.memory_space<vmem>>, vector<1x256xbf16>
    %13 = vector.broadcast %12 : vector<1x256xbf16> to vector<16x256xbf16>
    %14 = arith.addf %11, %13 : vector<16x256xbf16>
    %cst_11 = arith.constant 0.000000e+00 : bf16
    %15 = vector.broadcast %cst_11 : bf16 to vector<16x256xbf16>
    %16 = arith.maximumf %14, %15 : vector<16x256xbf16>
    %c0_12 = arith.constant 0 : index
    %c0_13 = arith.constant 0 : index
    %17 = vector.load %arg6[%c0_12, %c0_13] : memref<256x256xbf16, #tpu.memory_space<vmem>>, vector<256x256xbf16>
    %cst_14 = arith.constant dense<0.000000e+00> : vector<16x256xf32>
    %18 = tpu.matmul %16, %17, %cst_14 {dimension_numbers = #tpu.dot_dimension_numbers<[1], [0], [0], [1], [0, 0, 1, 1], [], []>} : vector<16x256xbf16>, vector<256x256xbf16>, vector<16x256xf32> -> vector<16x256xf32>
    %19 = arith.truncf %18 : vector<16x256xf32> to vector<16x256xbf16>
    %c0_15 = arith.constant 0 : index
    %c0_16 = arith.constant 0 : index
    %20 = vector.load %arg7[%c0_15, %c0_16] : memref<1x256xbf16, #tpu.memory_space<vmem>>, vector<1x256xbf16>
    %21 = vector.broadcast %20 : vector<1x256xbf16> to vector<16x256xbf16>
    %22 = arith.addf %19, %21 : vector<16x256xbf16>
    %cst_17 = arith.constant 0.000000e+00 : bf16
    %23 = vector.broadcast %cst_17 : bf16 to vector<16x256xbf16>
    %24 = arith.maximumf %22, %23 : vector<16x256xbf16>
    %c0_18 = arith.constant 0 : index
    %c0_19 = arith.constant 0 : index
    %25 = vector.load %arg8[%c0_18, %c0_19] : memref<256x128xbf16, #tpu.memory_space<vmem>>, vector<256x128xbf16>
    %cst_20 = arith.constant dense<0.000000e+00> : vector<16x128xf32>
    %26 = tpu.matmul %24, %25, %cst_20 {dimension_numbers = #tpu.dot_dimension_numbers<[1], [0], [0], [1], [0, 0, 1, 1], [], []>} : vector<16x256xbf16>, vector<256x128xbf16>, vector<16x128xf32> -> vector<16x128xf32>
    %27 = arith.truncf %26 : vector<16x128xf32> to vector<16x128xbf16>
    %c0_21 = arith.constant 0 : index
    %c0_22 = arith.constant 0 : index
    %28 = vector.load %arg9[%c0_21, %c0_22] : memref<1x128xbf16, #tpu.memory_space<vmem>>, vector<1x128xbf16>
    %29 = vector.broadcast %28 : vector<1x128xbf16> to vector<16x128xbf16>
    %30 = arith.addf %27, %29 : vector<16x128xbf16>
    %c0_23 = arith.constant 0 : index
    %c0_24 = arith.constant 0 : index
    %31 = vector.load %arg10[%c0_23, %c0_24] : memref<16x128xbf16, #tpu.memory_space<vmem>>, vector<16x128xbf16>
    tpu.vector_store %arg10[%c0_23, %c0_24], %30 {strides = array<i32>} : memref<16x128xbf16, #tpu.memory_space<vmem>>, vector<16x128xbf16>,
    return
  }
  func.func @transform_0(%arg0: i32) -> (i32, i32) {
    %c0_i32 = arith.constant 0 : i32
    %c0_i32_0 = arith.constant 0 : i32
    return %arg0, %c0_i32 : i32, i32
  }
  func.func @transform_1(%arg0: i32) -> (i32, i32) {
    %c0_i32 = arith.constant 0 : i32
    %c0_i32_0 = arith.constant 0 : i32
    %c0_i32_1 = arith.constant 0 : i32
    return %c0_i32, %c0_i32_0 : i32, i32
  }
  func.func @transform_2(%arg0: i32) -> (i32, i32) {
    %c0_i32 = arith.constant 0 : i32
    %c0_i32_0 = arith.constant 0 : i32
    %c0_i32_1 = arith.constant 0 : i32
    return %c0_i32, %c0_i32_0 : i32, i32
  }
  func.func @transform_3(%arg0: i32) -> (i32, i32) {
    %c0_i32 = arith.constant 0 : i32
    %c0_i32_0 = arith.constant 0 : i32
    %c0_i32_1 = arith.constant 0 : i32
    return %c0_i32, %c0_i32_0 : i32, i32
  }
  func.func @transform_4(%arg0: i32) -> (i32, i32) {
    %c0_i32 = arith.constant 0 : i32
    %c0_i32_0 = arith.constant 0 : i32
    %c0_i32_1 = arith.constant 0 : i32
    return %c0_i32, %c0_i32_0 : i32, i32
  }
  func.func @transform_5(%arg0: i32) -> (i32, i32) {
    %c0_i32 = arith.constant 0 : i32
    %c0_i32_0 = arith.constant 0 : i32
    %c0_i32_1 = arith.constant 0 : i32
    return %c0_i32, %c0_i32_0 : i32, i32
  }
  func.func @transform_6(%arg0: i32) -> (i32, i32) {
    %c0_i32 = arith.constant 0 : i32
    %c0_i32_0 = arith.constant 0 : i32
    %c0_i32_1 = arith.constant 0 : i32
    return %c0_i32, %c0_i32_0 : i32, i32
  }
  func.func @transform_7(%arg0: i32) -> (i32, i32) {
    %c0_i32 = arith.constant 0 : i32
    %c0_i32_0 = arith.constant 0 : i32
    %c0_i32_1 = arith.constant 0 : i32
    return %c0_i32, %c0_i32_0 : i32, i32
  }
  func.func @transform_8(%arg0: i32) -> (i32, i32) {
    %c0_i32 = arith.constant 0 : i32
    %c0_i32_0 = arith.constant 0 : i32
    %c0_i32_1 = arith.constant 0 : i32
    return %c0_i32, %c0_i32_0 : i32, i32
  }
  func.func @transform_9(%arg0: i32) -> (i32, i32) {
    %c0_i32 = arith.constant 0 : i32
    %c0_i32_0 = arith.constant 0 : i32
    return %arg0, %c0_i32 : i32, i32
  }
}

</mosaic_0001>

<bundles_post_ra>
// kernel: mlp_forward.1
= control target key start
LH: loop header
LB: loop body
LE: loop exit
PB: predicated region body
PF: predicated region fallthrough
CT: control target
= control target key end

     0   :  { %14 = vsyncpa [#allocation3], 0  ;;  %s1351_s12 = smov [#allocation2]   ;;  %s1352_s14 = smov 128   ;;  %s1691_s0 = inlined_call_operand.vmem [shape: bf16[16,32], index: 0, kind: input, shape index: {}]   ;;  %s1692_s1 = inlined_call_operand.vmem [shape: bf16[32,256], index: 1, kind: input, shape index: {}]   ;;  %s1693_s2 = inlined_call_operand.vmem [shape: bf16[1,256], index: 2, kind: input, shape index: {}]   ;;  %s1694_s3 = inlined_call_operand.vmem [shape: bf16[256,256], index: 3, kind: input, shape index: {}]   ;;  %s1695_s4 = inlined_call_operand.vmem [shape: bf16[1,256], index: 4, kind: input, shape index: {}]   ;;  %s1696_s5 = inlined_call_operand.hbm [shape: bf16[256,256], index: 5, kind: input, shape index: {}]   ;;  %s1697_s6 = inlined_call_operand.vmem [shape: bf16[1,256], index: 6, kind: input, shape index: {}]   ;;  %s1698_s7 = inlined_call_operand.vmem [shape: bf16[256,128], index: 7, kind: input, shape index: {}]   ;;  %s1699_s8 = inlined_call_operand.vmem [shape: bf16[1,128], index: 8, kind: input, shape index: {}]   ;;  %s1700_s9 = inlined_call_operand.vmem [shape: bf16[16,128], index: 9, kind: output, shape index: {}]  }
   0x1   :  { %s29_s11 = sshll.u32 %s1696_s5, 4  ;;  %s31_s13 = sshll.u32 %s1351_s12, 4  ;;  %s30_s11 = int_to_ptr.hbm [resolvable:$true] %s29_s11  ;;  %s32_s13 = int_to_ptr.vmem [resolvable:$true] %s31_s13 }
   0x2   :  { %s1353_s15 = smov 8  }
   0x3   :  { %37 = dma.hbm_to_vmem [thread:$0]  %s30_s11, 4096, %s32_s13, [#allocation3], %s1352_s14, %s1352_s14, %s1353_s15  }
   0x4   :  { %1349 = dma.done.wait [#allocation3], 4096  }
   0x5   :  { %1350 = vsyncadd [#allocation3], 4294963200  ;;  %v904_v0 = vld [vmem:[%s1692_s1 + $0x10] sm:$0xf]  ;;  %v1236_v1 = vld [vmem:[%s1692_s1 + $0x14] sm:$0xf0] }
   0x6   :  { %v1235_v2 = vld [vmem:[%s1692_s1 + $0x14] sm:$0xf]  ;;  %v905_v3 = vor.u32 %v1236_v1, %v904_v0  ;;  %v906_v4 = vld [vmem:[%s1692_s1 + $0x18] sm:$0xf0]  ;;  %v896_v5 = vld [vmem:[%s1692_s1] sm:$0xf] }
   0x7   :  { %v1234_v6 = vld [vmem:[%s1692_s1 + $0x4] sm:$0xf0]  ;;  %v909_v7 = vor.u32 %v1235_v2, %v906_v4  ;;  %v1233_v8 = vld [vmem:[%s1692_s1 + $0x4] sm:$0xf]  ;;  %v898_v9 = vld [vmem:[%s1692_s1 + $0x8] sm:$0xf0] }
   0x8   :  { %vm80_vm0 = vcmask 261120   ;;  %90 = vmatpush.bf16.msra.mxu0 %v905_v3  ;;  %v897_v10 = vor.u32 %v1234_v6, %v896_v5  ;;  %v970_v11 = vld [vmem:[%s1694_s3 + $0x70] sm:$0xf]  ;;  %v1252_v12 = vld [vmem:[%s1694_s3 + $0x74] sm:$0xf0]  ;;  %v901_v14 = vor.u32 %v1233_v8, %v898_v9  ;;  %v1232_v15 = vld [vmem:[%s1691_s0] sm:$0xff] }
   0x9   :  { %v1034_v13 = vld [vmem:[%s1694_s3 + $0xf0] sm:$0xf]  ;;  %104 = vmatpush.bf16.msra.mxu1 %v909_v7  ;;  %v971_v16 = vor.u32 %v1252_v12, %v970_v11  ;;  %v1268_v17 = vld [vmem:[%s1694_s3 + $0xf4] sm:$0xf0]  ;;  %v1251_v18 = vld [vmem:[%s1694_s3 + $0x74] sm:$0xf] }
   0xa   :  { %v972_v19 = vld [vmem:[%s1694_s3 + $0x78] sm:$0xf0]  ;;  %v1035_v20 = vor.u32 %v1268_v17, %v1034_v13  ;;  %v1267_v22 = vld [vmem:[%s1694_s3 + $0xf4] sm:$0xf]  ;;  %v962_v24 = vld [vmem:[%s1694_s3 + $0x60] sm:$0xf] }
   0xb   :  { %v975_v21 = vor.u32 %v1251_v18, %v972_v19  ;;  %v1036_v23 = vld [vmem:[%s1694_s3 + $0xf8] sm:$0xf0]  ;;  %339 = vmatpush.bf16.msra.mxu2 %v971_v16  ;;  %v1250_v26 = vld [vmem:[%s1694_s3 + $0x64] sm:$0xf0]  ;;  %v1026_v27 = vld [vmem:[%s1694_s3 + $0xe0] sm:$0xf] }
   0xc   :  { %v1039_v25 = vor.u32 %v1267_v22, %v1036_v23  ;;  %v1266_v28 = vld [vmem:[%s1694_s3 + $0xe4] sm:$0xf0]  ;;  %91 = vmatpush.bf16.msra.mxu0 %v897_v10  ;;  %353 = vmatpush.bf16.msra.mxu3 %v1035_v20  ;;  %v963_v29 = vor.u32 %v1250_v26, %v962_v24  ;;  %v1249_v31 = vld [vmem:[%s1694_s3 + $0x64] sm:$0xf]  ;;  %v964_v32 = vld [vmem:[%s1694_s3 + $0x68] sm:$0xf0] }
   0xd   :  { %v1027_v30 = vor.u32 %v1266_v28, %v1026_v27  ;;  %v1265_v33 = vld [vmem:[%s1694_s3 + $0xe4] sm:$0xf]  ;;  %105 = vmatpush.bf16.msra.mxu1 %v901_v14  ;;  %v967_v34 = vor.u32 %v1249_v31, %v964_v32  ;;  %v1028_v35 = vld [vmem:[%s1694_s3 + $0xe8] sm:$0xf0]  ;;  %v954_v36 = vld [vmem:[%s1694_s3 + $0x50] sm:$0xf] }
   0xe   :  { %v1248_v37 = vld [vmem:[%s1694_s3 + $0x54] sm:$0xf0]  ;;  %v1031_v38 = vor.u32 %v1265_v33, %v1028_v35  ;;  %v1018_v39 = vld [vmem:[%s1694_s3 + $0xd0] sm:$0xf]  ;;  %v1247_v41 = vld [vmem:[%s1694_s3 + $0x54] sm:$0xf] }
   0xf   :  { %v1264_v40 = vld [vmem:[%s1694_s3 + $0xd4] sm:$0xf0]  ;;  %910 = vmatmul.msk.bf16.vlgmr.msra.gmra.mxu0 %vm80_vm0, %v1232_v15  ;;  %340 = vmatpush.bf16.msra.mxu2 %v963_v29  ;;  %v955_v42 = vor.u32 %v1248_v37, %v954_v36  ;;  %v956_v43 = vld [vmem:[%s1694_s3 + $0x58] sm:$0xf0]  ;;  %v1263_v44 = vld [vmem:[%s1694_s3 + $0xd4] sm:$0xf] }
  0x10   :  { %367 = vmatpush.bf16.msrb.mxu0 %v975_v21  ;;  %v1020_v45 = vld [vmem:[%s1694_s3 + $0xd8] sm:$0xf0]  ;;  %911 = vmatmul.msk.bf16.vlgmr.msra.gmra.mxu1 %vm80_vm0, %v1232_v15  ;;  %v1019_v46 = vor.u32 %v1264_v40, %v1018_v39  ;;  %v959_v47 = vor.u32 %v1247_v41, %v956_v43  ;;  %v114_v49 = vld [vmem:[%s1693_s2] sm:$0x3]  ;;  %v1246_v51 = vld [vmem:[%s1694_s3 + $0x44] sm:$0xf0] }
  0x11   :  { %381 = vmatpush.bf16.msrb.mxu1 %v1039_v25  ;;  %354 = vmatpush.bf16.msra.mxu3 %v1027_v30  ;;  %v1023_v48 = vor.u32 %v1263_v44, %v1020_v45  ;;  %116 = vst [vmem:[#allocation1] ss:$9 sm:$0xff] %v114_v49  ;;  %v946_v50 = vld [vmem:[%s1694_s3 + $0x40] sm:$0xf]  ;;  %v1262_v54 = vld [vmem:[%s1694_s3 + $0xc4] sm:$0xf0] }
  0x12   :  { %v1010_v52 = vld [vmem:[%s1694_s3 + $0xc0] sm:$0xf]  ;;  %v947_v53 = vor.u32 %v1246_v51, %v946_v50  ;;  %v1245_v55 = vld [vmem:[%s1694_s3 + $0x44] sm:$0xf]  ;;  %v948_v56 = vld [vmem:[%s1694_s3 + $0x48] sm:$0xf0] }
  0x13   :  { %341 = vmatpush.bf16.msra.mxu2 %v955_v42  ;;  %v1011_v57 = vor.u32 %v1262_v54, %v1010_v52  ;;  %v951_v58 = vor.u32 %v1245_v55, %v948_v56  ;;  %v1261_v59 = vld [vmem:[%s1694_s3 + $0xc4] sm:$0xf]  ;;  %v1012_v60 = vld [vmem:[%s1694_s3 + $0xc8] sm:$0xf0]  ;;  %v938_v62 = vld [vmem:[%s1694_s3 + $0x30] sm:$0xf] }
  0x14   :  { %368 = vmatpush.bf16.msrb.mxu0 %v967_v34  ;;  %v1015_v61 = vor.u32 %v1261_v59, %v1012_v60  ;;  %v1244_v63 = vld [vmem:[%s1694_s3 + $0x34] sm:$0xf0]  ;;  %v1002_v0 = vld [vmem:[%s1694_s3 + $0xb0] sm:$0xf]  ;;  %v1243_v3 = vld [vmem:[%s1694_s3 + $0x34] sm:$0xf] }
  0x15   :  { %382 = vmatpush.bf16.msrb.mxu1 %v1031_v38  ;;  %355 = vmatpush.bf16.msra.mxu3 %v1019_v46  ;;  %v939_v1 = vor.u32 %v1244_v63, %v938_v62  ;;  %v1260_v2 = vld [vmem:[%s1694_s3 + $0xb4] sm:$0xf0]  ;;  %v940_v4 = vld [vmem:[%s1694_s3 + $0x38] sm:$0xf0]  ;;  %v1259_v7 = vld [vmem:[%s1694_s3 + $0xb4] sm:$0xf] }
  0x16   :  { %v1003_v5 = vor.u32 %v1260_v2, %v1002_v0  ;;  %v943_v6 = vor.u32 %v1243_v3, %v940_v4  ;;  %v1004_v8 = vld [vmem:[%s1694_s3 + $0xb8] sm:$0xf0]  ;;  %v930_v10 = vld [vmem:[%s1694_s3 + $0x20] sm:$0xf]  ;;  %v1242_v11 = vld [vmem:[%s1694_s3 + $0x24] sm:$0xf0] }
  0x17   :  { %342 = vmatpush.bf16.msra.mxu2 %v947_v53  ;;  %v1007_v9 = vor.u32 %v1259_v7, %v1004_v8  ;;  %v994_v12 = vld [vmem:[%s1694_s3 + $0xa0] sm:$0xf]  ;;  %v931_v13 = vor.u32 %v1242_v11, %v930_v10  ;;  %v1258_v14 = vld [vmem:[%s1694_s3 + $0xa4] sm:$0xf0]  ;;  %v1241_v15 = vld [vmem:[%s1694_s3 + $0x24] sm:$0xf] }
  0x18   :  { %369 = vmatpush.bf16.msrb.mxu0 %v959_v47  ;;  %v932_v16 = vld [vmem:[%s1694_s3 + $0x28] sm:$0xf0]  ;;  %v995_v17 = vor.u32 %v1258_v14, %v994_v12  ;;  %v1257_v19 = vld [vmem:[%s1694_s3 + $0xa4] sm:$0xf]  ;;  %v922_v22 = vld [vmem:[%s1694_s3 + $0x10] sm:$0xf] }
  0x19   :  { %383 = vmatpush.bf16.msrb.mxu1 %v1023_v48  ;;  %356 = vmatpush.bf16.msra.mxu3 %v1011_v57  ;;  %v935_v18 = vor.u32 %v1241_v15, %v932_v16  ;;  %v996_v20 = vld [vmem:[%s1694_s3 + $0xa8] sm:$0xf0]  ;;  %v1240_v23 = vld [vmem:[%s1694_s3 + $0x14] sm:$0xf0]  ;;  %v986_v24 = vld [vmem:[%s1694_s3 + $0x90] sm:$0xf] }
  0x1a   :  { %v999_v21 = vor.u32 %v1257_v19, %v996_v20  ;;  %v923_v25 = vor.u32 %v1240_v23, %v922_v22  ;;  %v1256_v26 = vld [vmem:[%s1694_s3 + $0x94] sm:$0xf0]  ;;  %v1239_v27 = vld [vmem:[%s1694_s3 + $0x14] sm:$0xf]  ;;  %v924_v28 = vld [vmem:[%s1694_s3 + $0x18] sm:$0xf0] }
  0x1b   :  { %343 = vmatpush.bf16.msra.mxu2 %v939_v1  ;;  %v987_v29 = vor.u32 %v1256_v26, %v986_v24  ;;  %v927_v30 = vor.u32 %v1239_v27, %v924_v28  ;;  %v1255_v31 = vld [vmem:[%s1694_s3 + $0x94] sm:$0xf]  ;;  %v988_v32 = vld [vmem:[%s1694_s3 + $0x98] sm:$0xf0]  ;;  %v914_v33 = vld [vmem:[%s1694_s3] sm:$0xf] }
  0x1c   :  { %370 = vmatpush.bf16.msrb.mxu0 %v951_v58  ;;  %v991_v34 = vor.u32 %v1255_v31, %v988_v32  ;;  %v1238_v35 = vld [vmem:[%s1694_s3 + $0x4] sm:$0xf0]  ;;  %v978_v36 = vld [vmem:[%s1694_s3 + $0x80] sm:$0xf]  ;;  %v1237_v40 = vld [vmem:[%s1694_s3 + $0x4] sm:$0xf] }
  0x1d   :  { %384 = vmatpush.bf16.msrb.mxu1 %v1015_v61  ;;  %357 = vmatpush.bf16.msra.mxu3 %v1003_v5  ;;  %v1254_v37 = vld [vmem:[%s1694_s3 + $0x84] sm:$0xf0]  ;;  %v915_v38 = vor.u32 %v1238_v35, %v914_v33  ;;  %v916_v41 = vld [vmem:[%s1694_s3 + $0x8] sm:$0xf0]  ;;  %v1253_v42 = vld [vmem:[%s1694_s3 + $0x84] sm:$0xf] }
  0x1e   :  { %v979_v39 = vor.u32 %v1254_v37, %v978_v36  ;;  %v919_v43 = vor.u32 %v1237_v40, %v916_v41  ;;  %v980_v44 = vld [vmem:[%s1694_s3 + $0x88] sm:$0xf0]  ;;  %v117_v46 = vld [vmem:[#allocation1] sm:$0xff]  ;;  %v1098_v49 = vld [vmem:[#allocation2 + $0x70] sm:$0xf] }
  0x1f   :  { %344 = vmatpush.bf16.msra.mxu2 %v931_v13  ;;  %v983_v45 = vor.u32 %v1253_v42, %v980_v44  ;;  %v118_v47 = vld [vmem:[#allocation1 + $0x9] sm:$0xff]  ;;  %v397_v48 = vld [vmem:[%s1695_s4] sm:$0x3]  ;;  %v1162_v52 = vld [vmem:[#allocation2 + $0xf0] sm:$0xf]  ;;  %v119_v62 = vpack.i.b16 %v117_v46, %v117_v46 }
  0x20   :  { %371 = vmatpush.bf16.msrb.mxu0 %v943_v6  ;;  %399 = vst [vmem:[#allocation1] ss:$9 sm:$0xff] %v397_v48  ;;  %v1284_v50 = vld [vmem:[#allocation2 + $0x74] sm:$0xf0]  ;;  %v1283_v54 = vld [vmem:[#allocation2 + $0x74] sm:$0xf]  ;;  %v122_v63 = vpack.i.b16 %v118_v47, %v118_v47 }
  0x21   :  { %385 = vmatpush.bf16.msrb.mxu1 %v1007_v9  ;;  %358 = vmatpush.bf16.msra.mxu3 %v995_v17  ;;  %v1099_v51 = vor.u32 %v1284_v50, %v1098_v49  ;;  %v1300_v53 = vld [vmem:[#allocation2 + $0xf4] sm:$0xf0]  ;;  %v1100_v56 = vld [vmem:[#allocation2 + $0x78] sm:$0xf0]  ;;  %v1299_v57 = vld [vmem:[#allocation2 + $0xf4] sm:$0xf] }
  0x22   :  { %v1163_v55 = vor.u32 %v1300_v53, %v1162_v52  ;;  %v1164_v58 = vld [vmem:[#allocation2 + $0xf8] sm:$0xf0]  ;;  %v1103_v59 = vor.u32 %v1283_v54, %v1100_v56  ;;  %v121_v2 = vperm.slane %v119_v62, 0  ;;  %v124_v3 = vperm.slane %v122_v63, 0  ;;  %v1090_v23 = vld [vmem:[#allocation2 + $0x60] sm:$0xf] }
  0x23   :  { %345 = vmatpush.bf16.msra.mxu2 %v923_v25  ;;  %v1167_v60 = vor.u32 %v1299_v57, %v1164_v58  ;;  %v1282_v24 = vld [vmem:[#allocation2 + $0x64] sm:$0xf0]  ;;  %v1154_v25 = vld [vmem:[#allocation2 + $0xe0] sm:$0xf]  ;;  %v1281_v28 = vld [vmem:[#allocation2 + $0x64] sm:$0xf] }
  0x24   :  { %372 = vmatpush.bf16.msrb.mxu0 %v935_v18  ;;  %v129_v7 = vunpack.c.l.bf16 %v121_v2  ;;  %v130_v8 = vunpack.c.l.bf16 %v124_v3  ;;  %v1091_v26 = vor.u32 %v1282_v24, %v1090_v23  ;;  %v1298_v27 = vld [vmem:[#allocation2 + $0xe4] sm:$0xf0]  ;;  %v1297_v32 = vld [vmem:[#allocation2 + $0xe4] sm:$0xf]  ;;  %v1156_v33 = vld [vmem:[#allocation2 + $0xe8] sm:$0xf0] }
  0x25   :  { %386 = vmatpush.bf16.msrb.mxu1 %v999_v21  ;;  %359 = vmatpush.bf16.msra.mxu3 %v987_v29  ;;  %v1092_v29 = vld [vmem:[#allocation2 + $0x68] sm:$0xf0]  ;;  %v1082_v35 = vld [vmem:[#allocation2 + $0x50] sm:$0xf]  ;;  %v1280_v36 = vld [vmem:[#allocation2 + $0x54] sm:$0xf0] }
  0x26   :  { %v1095_v31 = vor.u32 %v1281_v28, %v1092_v29  ;;  %v1146_v37 = vld [vmem:[#allocation2 + $0xd0] sm:$0xf]  ;;  %v1279_v40 = vld [vmem:[#allocation2 + $0x54] sm:$0xf]  ;;  %v1084_v41 = vld [vmem:[#allocation2 + $0x58] sm:$0xf0] }
  0x27   :  { %346 = vmatpush.bf16.msra.mxu2 %v915_v38  ;;  %v1083_v38 = vor.u32 %v1280_v36, %v1082_v35  ;;  %v1295_v44 = vld [vmem:[#allocation2 + $0xd4] sm:$0xf]  ;;  %v1074_v47 = vld [vmem:[#allocation2 + $0x40] sm:$0xf]  ;;  %v1278_v48 = vld [vmem:[#allocation2 + $0x44] sm:$0xf0] }
  0x28   :  { %373 = vmatpush.bf16.msrb.mxu0 %v927_v30  ;;  %v1155_v30 = vor.u32 %v1298_v27, %v1154_v25  ;;  %v1138_v49 = vld [vmem:[#allocation2 + $0xc0] sm:$0xf]  ;;  %v1075_v50 = vor.u32 %v1278_v48, %v1074_v47  ;;  %v1277_v52 = vld [vmem:[#allocation2 + $0x44] sm:$0xf]  ;;  %v1076_v53 = vld [vmem:[#allocation2 + $0x48] sm:$0xf0] }
  0x29   :  { %387 = vmatpush.bf16.msrb.mxu1 %v991_v34  ;;  %360 = vmatpush.bf16.msra.mxu3 %v979_v39  ;;  %v1159_v34 = vor.u32 %v1297_v32, %v1156_v33  ;;  %v1296_v39 = vld [vmem:[#allocation2 + $0xd4] sm:$0xf0]  ;;  %v1293_v56 = vld [vmem:[#allocation2 + $0xc4] sm:$0xf]  ;;  %v1140_v57 = vld [vmem:[#allocation2 + $0xc8] sm:$0xf0] }
  0x2a   :  { %v1147_v42 = vor.u32 %v1296_v39, %v1146_v37  ;;  %v1143_v58 = vor.u32 %v1293_v56, %v1140_v57  ;;  %v1292_v63 = vld [vmem:[#allocation2 + $0xb4] sm:$0xf0]  ;;  %v1271_v24 = vld [vmem:[#allocation2 + $0x14] sm:$0xf]  ;;  %v1052_v25 = vld [vmem:[#allocation2 + $0x18] sm:$0xf0] }
  0x2b   :  { %622 = vmatpush.bf16.msrb.mxu2 %v1099_v51  ;;  %v1294_v51 = vld [vmem:[#allocation2 + $0xc4] sm:$0xf0]  ;;  %v1288_v23 = vld [vmem:[#allocation2 + $0x94] sm:$0xf0]  ;;  %v1055_v27 = vor.u32 %v1271_v24, %v1052_v25  ;;  %v1287_v28 = vld [vmem:[#allocation2 + $0x94] sm:$0xf] }
  0x2c   :  { %374 = vmatpush.bf16.msrb.mxu0 %v919_v43  ;;  %v1087_v43 = vor.u32 %v1279_v40, %v1084_v41  ;;  %v1139_v54 = vor.u32 %v1294_v51, %v1138_v49  ;;  %v1116_v29 = vld [vmem:[#allocation2 + $0x98] sm:$0xf0]  ;;  %v1270_v32 = vld [vmem:[#allocation2 + $0x4] sm:$0xf0]  ;;  %v1106_v33 = vld [vmem:[#allocation2 + $0x80] sm:$0xf] }
  0x2d   :  { %388 = vmatpush.bf16.msrb.mxu1 %v983_v45  ;;  %636 = vmatpush.bf16.msrb.mxu3 %v1163_v55  ;;  %v1148_v45 = vld [vmem:[#allocation2 + $0xd8] sm:$0xf0]  ;;  %v1079_v55 = vor.u32 %v1277_v52, %v1076_v53  ;;  %v1269_v37 = vld [vmem:[#allocation2 + $0x4] sm:$0xf]  ;;  %v1108_v41 = vld [vmem:[#allocation2 + $0x88] sm:$0xf0] }
  0x2e   :  { %v1151_v46 = vor.u32 %v1295_v44, %v1148_v45  ;;  %v1285_v39 = vld [vmem:[#allocation2 + $0x84] sm:$0xf]  ;;  %v680_v45 = vld [vmem:[%s1697_s6] sm:$0x3]  ;;  %v1316_v47 = vld [vmem:[%s1698_s7 + $0x78] sm:$0xff] }
  0x2f   :  { %623 = vmatpush.bf16.msrb.mxu2 %v1091_v26  ;;  %v401_v44 = vld [vmem:[#allocation1 + $0x9] sm:$0xff]  ;;  %v1304_v24 = vld [vmem:[%s1698_s7 + $0x18] sm:$0xff] }
  0x30   :  { %650 = vmatpush.bf16.msra.mxu0 %v1103_v59  ;;  %v1066_v59 = vld [vmem:[#allocation2 + $0x30] sm:$0xf]  ;;  %v405_v53 = vpack.i.b16 %v401_v44, %v401_v44 }
  0x31   :  { %664 = vmatpush.bf16.msra.mxu1 %v1167_v60  ;;  %637 = vmatpush.bf16.msrb.mxu3 %v1155_v30  ;;  %v1276_v60 = vld [vmem:[#allocation2 + $0x34] sm:$0xf0]  ;;  %v1042_v30 = vld [vmem:[#allocation2] sm:$0xf]  ;;  %v1312_v25 = vld [vmem:[%s1698_s7 + $0x58] sm:$0xff] }
  0x32   :  { %v1067_v62 = vor.u32 %v1276_v60, %v1066_v59  ;;  %v1043_v35 = vor.u32 %v1270_v32, %v1042_v30  ;;  %v407_v57 = vperm.slane %v405_v53, 0  ;;  %v1301_v30 = vld [vmem:[%s1698_s7] sm:$0xff] }
  0x33   :  { %624 = vmatpush.bf16.msrb.mxu2 %v1083_v38  ;;  %v1044_v38 = vld [vmem:[#allocation2 + $0x8] sm:$0xf0] }
  0x34   :  { %651 = vmatpush.bf16.msra.mxu0 %v1095_v31  ;;  %v1119_v31 = vor.u32 %v1287_v28, %v1116_v29  ;;  %v1047_v40 = vor.u32 %v1269_v37, %v1044_v38  ;;  %v1302_v28 = vld [vmem:[%s1698_s7 + $0x8] sm:$0xff] }
  0x35   :  { %665 = vmatpush.bf16.msra.mxu1 %v1159_v34  ;;  %638 = vmatpush.bf16.msrb.mxu3 %v1147_v42  ;;  %v1286_v34 = vld [vmem:[#allocation2 + $0x84] sm:$0xf0]  ;;  %v1111_v42 = vor.u32 %v1285_v39, %v1108_v41  ;;  %v1310_v29 = vld [vmem:[%s1698_s7 + $0x48] sm:$0xff] }
  0x36   :  { %v1107_v36 = vor.u32 %v1286_v34, %v1106_v33 }
  0x37   :  { %625 = vmatpush.bf16.msrb.mxu2 %v1075_v50 }
  0x38   :  { %652 = vmatpush.bf16.msra.mxu0 %v1087_v43  ;;  %v400_v43 = vld [vmem:[#allocation1] sm:$0xff] }
  0x39   :  { %666 = vmatpush.bf16.msra.mxu1 %v1151_v46  ;;  %639 = vmatpush.bf16.msrb.mxu3 %v1139_v54  ;;  %682 = vst [vmem:[#allocation1] ss:$9 sm:$0xff] %v680_v45  ;;  %v1308_v46 = vld [vmem:[%s1698_s7 + $0x38] sm:$0xff]  ;;  %v402_v52 = vpack.i.b16 %v400_v43, %v400_v43 }
  0x3b   :  { %626 = vmatpush.bf16.msrb.mxu2 %v1067_v62  ;;  %v404_v56 = vperm.slane %v402_v52, 0 }
  0x3c   :  { %653 = vmatpush.bf16.msra.mxu0 %v1079_v55 }
  0x3d   :  { %667 = vmatpush.bf16.msra.mxu1 %v1143_v58 }
  0x40   :  { %v683_v34 = vld [vmem:[#allocation1] sm:$0xff] }
  0x41   :  { %v685_v38 = vpack.i.b16 %v683_v34, %v683_v34 }
  0x8c   :  { %v93_v61 = vpop.f32.mrf.mxu0 }
  0x8d   :  { %v107_v0 = vpop.f32.mrf.mxu1 }
  0x8e   :  { %v112_v1 = vpack.c.bf16 %v107_v0, %v93_v61  ;;  %v1130_v61 = vld [vmem:[#allocation2 + $0xb0] sm:$0xf]  ;;  %v1275_v0 = vld [vmem:[#allocation2 + $0x34] sm:$0xf] }
  0x8f   :  { %v1131_v2 = vor.u32 %v1292_v63, %v1130_v61  ;;  %v412_v63 = vunpack.c.l.bf16 %v404_v56 }
  0x90   :  { %v125_v4 = vunpack.c.l.bf16 %v112_v1  ;;  %v126_v5 = vunpack.c.h.bf16 %v112_v1  ;;  %v1068_v1 = vld [vmem:[#allocation2 + $0x38] sm:$0xf0] }
  0x91   :  { %v1071_v3 = vor.u32 %v1275_v0, %v1068_v1  ;;  %640 = vmatpush.bf16.msrb.mxu3 %v1131_v2  ;;  %v413_v0 = vunpack.c.l.bf16 %v407_v57 }
  0x92   :  { %v131_v13 = vadd.f32 %v129_v7, %v125_v4  ;;  %v132_v14 = vadd.f32 %v130_v8, %v126_v5  ;;  %v1291_v4 = vld [vmem:[#allocation2 + $0xb4] sm:$0xf]  ;;  %v1132_v5 = vld [vmem:[#allocation2 + $0xb8] sm:$0xf0] }
  0x93   :  { %654 = vmatpush.bf16.msra.mxu0 %v1071_v3 }
  0x94   :  { %v95_v6 = vpop.f32.mrf.mxu0  ;;  %v141_v17 = vmax.f32 %v131_v13, 0.0  ;;  %v142_v19 = vmax.f32 %v132_v14, 0.0  ;;  %v1060_v13 = vld [vmem:[#allocation2 + $0x28] sm:$0xf0] }
  0x95   :  { %v109_v9 = vpop.f32.mrf.mxu1 }
  0x96   :  { %v113_v10 = vpack.c.bf16 %v109_v9, %v95_v6  ;;  %v1135_v6 = vor.u32 %v1291_v4, %v1132_v5  ;;  %v1122_v9 = vld [vmem:[#allocation2 + $0xa0] sm:$0xf] }
  0x98   :  { %v127_v11 = vunpack.c.l.bf16 %v113_v10  ;;  %v128_v12 = vunpack.c.h.bf16 %v113_v10  ;;  %668 = vmatpush.bf16.msra.mxu1 %v1135_v6 }
  0x9a   :  { %v133_v15 = vadd.f32 %v129_v7, %v127_v11  ;;  %v134_v16 = vadd.f32 %v130_v8, %v128_v12  ;;  %v1058_v7 = vld [vmem:[#allocation2 + $0x20] sm:$0xf]  ;;  %v1274_v8 = vld [vmem:[#allocation2 + $0x24] sm:$0xf0]  ;;  %v1273_v12 = vld [vmem:[#allocation2 + $0x24] sm:$0xf] }
  0x9b   :  { %v1059_v10 = vor.u32 %v1274_v8, %v1058_v7  ;;  %v1290_v11 = vld [vmem:[#allocation2 + $0xa4] sm:$0xf0] }
  0x9c   :  { %v143_v18 = vmax.f32 %v133_v15, 0.0  ;;  %v144_v20 = vmax.f32 %v134_v16, 0.0  ;;  %v1123_v14 = vor.u32 %v1290_v11, %v1122_v9  ;;  %v1063_v15 = vor.u32 %v1273_v12, %v1060_v13  ;;  %v1289_v16 = vld [vmem:[#allocation2 + $0xa4] sm:$0xf] }
  0x9d   :  { %627 = vmatpush.bf16.msrb.mxu2 %v1059_v10 }
  0x9e   :  { %v145_v21 = vpack.c.bf16 %v143_v18, %v141_v17  ;;  %v146_v22 = vpack.c.bf16 %v144_v20, %v142_v19  ;;  %v1124_v17 = vld [vmem:[#allocation2 + $0xa8] sm:$0xf0]  ;;  %641 = vmatpush.bf16.msrb.mxu3 %v1123_v14  ;;  %655 = vmatpush.bf16.msra.mxu0 %v1063_v15  ;;  %v1050_v19 = vld [vmem:[#allocation2 + $0x10] sm:$0xf]  ;;  %v1272_v20 = vld [vmem:[#allocation2 + $0x14] sm:$0xf0] }
  0x9f   :  { %v1127_v18 = vor.u32 %v1289_v16, %v1124_v17 }
  0xa0   :  { %347 = vmatmul.bf16.vlgmr.msra.gmra.mxu2 %v145_v21  ;;  %361 = vmatmul.bf16.vlgmr.msra.gmra.mxu3 %v146_v22 }
  0xa1   :  { %375 = vmatmul.bf16.vlgmr.msrb.gmra.mxu0 %v145_v21  ;;  %389 = vmatmul.bf16.vlgmr.msrb.gmra.mxu1 %v146_v22  ;;  %v1114_v21 = vld [vmem:[#allocation2 + $0x90] sm:$0xf]  ;;  %v1051_v22 = vor.u32 %v1272_v20, %v1050_v19  ;;  %v1315_v19 = vld [vmem:[%s1698_s7 + $0x70] sm:$0xff]  ;;  %v1306_v20 = vld [vmem:[%s1698_s7 + $0x28] sm:$0xff] }
  0xa2   :  { %669 = vmatpush.bf16.msra.mxu1 %v1127_v18  ;;  %v1115_v26 = vor.u32 %v1288_v23, %v1114_v21  ;;  %656 = vmatpush.bf16.msra.mxu0 %v1055_v27  ;;  %v1307_v18 = vld [vmem:[%s1698_s7 + $0x30] sm:$0xff]  ;;  %v1314_v21 = vld [vmem:[%s1698_s7 + $0x68] sm:$0xff]  ;;  %v1313_v23 = vld [vmem:[%s1698_s7 + $0x60] sm:$0xff] }
  0xa3   :  { %628 = vmatpush.bf16.msrb.mxu2 %v1051_v22  ;;  %v1305_v22 = vld [vmem:[%s1698_s7 + $0x20] sm:$0xff]  ;;  %v1311_v27 = vld [vmem:[%s1698_s7 + $0x50] sm:$0xff] }
  0xa4   :  { %642 = vmatpush.bf16.msrb.mxu3 %v1115_v26  ;;  %v1303_v26 = vld [vmem:[%s1698_s7 + $0x10] sm:$0xff] }
  0xa6   :  { %670 = vmatpush.bf16.msra.mxu1 %v1119_v31  ;;  %657 = vmatpush.bf16.msra.mxu0 %v1047_v40  ;;  %v1309_v31 = vld [vmem:[%s1698_s7 + $0x40] sm:$0xff] }
  0xa7   :  { %629 = vmatpush.bf16.msrb.mxu2 %v1043_v35  ;;  %v684_v35 = vld [vmem:[#allocation1 + $0x9] sm:$0xff] }
  0xa8   :  { %643 = vmatpush.bf16.msrb.mxu3 %v1107_v36  ;;  %v688_v39 = vpack.i.b16 %v684_v35, %v684_v35 }
  0xaa   :  { %671 = vmatpush.bf16.msra.mxu1 %v1111_v42  ;;  %v687_v42 = vperm.slane %v685_v38, 0  ;;  %v690_v43 = vperm.slane %v688_v39, 0 }
  0xab   :  { %841 = vmatpush.bf16.msra.mxu2 %v1308_v46 }
  0xac   :  { %855 = vmatpush.bf16.msra.mxu3 %v1316_v47  ;;  %v695_v47 = vunpack.c.l.bf16 %v687_v42 }
  0xaf   :  { %842 = vmatpush.bf16.msra.mxu2 %v1307_v18 }
  0xb0   :  { %856 = vmatpush.bf16.msra.mxu3 %v1315_v19 }
  0xb3   :  { %843 = vmatpush.bf16.msra.mxu2 %v1306_v20 }
  0xb4   :  { %857 = vmatpush.bf16.msra.mxu3 %v1314_v21 }
  0xb7   :  { %844 = vmatpush.bf16.msra.mxu2 %v1305_v22 }
  0xb8   :  { %858 = vmatpush.bf16.msra.mxu3 %v1313_v23 }
  0xbb   :  { %845 = vmatpush.bf16.msra.mxu2 %v1304_v24 }
  0xbc   :  { %859 = vmatpush.bf16.msra.mxu3 %v1312_v25 }
  0xbf   :  { %846 = vmatpush.bf16.msra.mxu2 %v1303_v26 }
  0xc0   :  { %860 = vmatpush.bf16.msra.mxu3 %v1311_v27 }
  0xc3   :  { %847 = vmatpush.bf16.msra.mxu2 %v1302_v28 }
  0xc4   :  { %861 = vmatpush.bf16.msra.mxu3 %v1310_v29 }
  0xc7   :  { %848 = vmatpush.bf16.msra.mxu2 %v1301_v30 }
  0xc8   :  { %862 = vmatpush.bf16.msra.mxu3 %v1309_v31 }
 0x11e   :  { %v376_v48 = vpop.f32.mrf.mxu0  ;;  %v390_v49 = vpop.f32.mrf.mxu1 }
 0x11f   :  { %v391_v55 = vadd.f32 %v390_v49, %v376_v48  ;;  %v696_v48 = vunpack.c.l.bf16 %v690_v43 }
 0x123   :  { %v348_v50 = vpop.f32.mrf.mxu2  ;;  %v362_v51 = vpop.f32.mrf.mxu3 }
 0x124   :  { %v363_v54 = vadd.f32 %v362_v51, %v348_v50 }
 0x126   :  { %v395_v58 = vpack.c.bf16 %v391_v55, %v363_v54  ;;  %v378_v59 = vpop.f32.mrf.mxu0  ;;  %v392_v60 = vpop.f32.mrf.mxu1 }
 0x127   :  { %v393_v3 = vadd.f32 %v392_v60, %v378_v59 }
 0x128   :  { %v408_v1 = vunpack.c.l.bf16 %v395_v58  ;;  %v409_v2 = vunpack.c.h.bf16 %v395_v58 }
 0x12a   :  { %v414_v8 = vadd.f32 %v412_v63, %v408_v1  ;;  %v415_v9 = vadd.f32 %v413_v0, %v409_v2 }
 0x12b   :  { %v350_v61 = vpop.f32.mrf.mxu2  ;;  %v364_v62 = vpop.f32.mrf.mxu3 }
 0x12c   :  { %v365_v4 = vadd.f32 %v364_v62, %v350_v61  ;;  %v424_v12 = vmax.f32 %v414_v8, 0.0  ;;  %v425_v14 = vmax.f32 %v415_v9, 0.0 }
 0x12e   :  { %v396_v5 = vpack.c.bf16 %v393_v3, %v365_v4 }
 0x130   :  { %v410_v6 = vunpack.c.l.bf16 %v396_v5  ;;  %v411_v7 = vunpack.c.h.bf16 %v396_v5 }
 0x132   :  { %v416_v10 = vadd.f32 %v412_v63, %v410_v6  ;;  %v417_v11 = vadd.f32 %v413_v0, %v411_v7  ;;  %v871_v6 = vld [vmem:[%s1699_s8] sm:$0x1] }
 0x133   :  { %v873_v8 = vpack.i.b16 %v871_v6, %v871_v6 }
 0x134   :  { %v426_v13 = vmax.f32 %v416_v10, 0.0  ;;  %v427_v15 = vmax.f32 %v417_v11, 0.0 }
 0x135   :  { %v875_v10 = vperm.slane %v873_v8, 0 }
 0x136   :  { %v428_v16 = vpack.c.bf16 %v426_v13, %v424_v12  ;;  %v429_v17 = vpack.c.bf16 %v427_v15, %v425_v14 }
 0x137   :  { %v878_v15 = vunpack.c.l.bf16 %v875_v10 }
 0x138   :  { %630 = vmatmul.bf16.vlgmr.msrb.gmra.mxu2 %v428_v16  ;;  %644 = vmatmul.bf16.vlgmr.msrb.gmra.mxu3 %v429_v17 }
 0x139   :  { %658 = vmatmul.bf16.vlgmr.msra.gmra.mxu0 %v428_v16  ;;  %672 = vmatmul.bf16.vlgmr.msra.gmra.mxu1 %v429_v17 }
 0x1b6   :  { %v659_v32 = vpop.f32.mrf.mxu0  ;;  %v673_v33 = vpop.f32.mrf.mxu1 }
 0x1b7   :  { %v674_v41 = vadd.f32 %v673_v33, %v659_v32 }
 0x1bb   :  { %v631_v36 = vpop.f32.mrf.mxu2  ;;  %v645_v37 = vpop.f32.mrf.mxu3 }
 0x1bc   :  { %v646_v40 = vadd.f32 %v645_v37, %v631_v36 }
 0x1be   :  { %v678_v44 = vpack.c.bf16 %v674_v41, %v646_v40  ;;  %v661_v45 = vpop.f32.mrf.mxu0  ;;  %v675_v46 = vpop.f32.mrf.mxu1 }
 0x1bf   :  { %v676_v53 = vadd.f32 %v675_v46, %v661_v45 }
 0x1c0   :  { %v691_v51 = vunpack.c.l.bf16 %v678_v44  ;;  %v692_v52 = vunpack.c.h.bf16 %v678_v44 }
 0x1c2   :  { %v697_v56 = vadd.f32 %v695_v47, %v691_v51  ;;  %v698_v57 = vadd.f32 %v696_v48, %v692_v52 }
 0x1c3   :  { %v633_v49 = vpop.f32.mrf.mxu2  ;;  %v647_v50 = vpop.f32.mrf.mxu3 }
 0x1c4   :  { %v648_v54 = vadd.f32 %v647_v50, %v633_v49  ;;  %v707_v62 = vmax.f32 %v697_v56, 0.0  ;;  %v708_v63 = vmax.f32 %v698_v57, 0.0 }
 0x1c6   :  { %v679_v55 = vpack.c.bf16 %v676_v53, %v648_v54 }
 0x1c8   :  { %v693_v58 = vunpack.c.l.bf16 %v679_v55  ;;  %v694_v59 = vunpack.c.h.bf16 %v679_v55 }
 0x1ca   :  { %v699_v60 = vadd.f32 %v695_v47, %v693_v58  ;;  %v700_v61 = vadd.f32 %v696_v48, %v694_v59 }
 0x1cc   :  { %v709_v0 = vmax.f32 %v699_v60, 0.0  ;;  %v710_v1 = vmax.f32 %v700_v61, 0.0 }
 0x1ce   :  { %v711_v2 = vpack.c.bf16 %v709_v0, %v707_v62  ;;  %v712_v3 = vpack.c.bf16 %v710_v1, %v708_v63 }
 0x1d0   :  { %849 = vmatmul.bf16.vlgmr.msra.gmra.mxu2 %v711_v2  ;;  %863 = vmatmul.bf16.vlgmr.msra.gmra.mxu3 %v712_v3 }
 0x253   :  { %v850_v4 = vpop.f32.mrf.mxu2  ;;  %v864_v5 = vpop.f32.mrf.mxu3 }
 0x254   :  { %v865_v7 = vadd.f32 %v864_v5, %v850_v4 }
 0x256   :  { %v869_v9 = vpack.c.bf16 %v865_v7, %v865_v7 }
 0x258   :  { %v876_v14 = vunpack.c.l.bf16 %v869_v9 }
 0x25a   :  { %v879_v18 = vadd.f32 %v878_v15, %v876_v14 }
 0x25b   :  { %v852_v11 = vpop.f32.mrf.mxu2  ;;  %v866_v12 = vpop.f32.mrf.mxu3 }
 0x25c   :  { %v867_v13 = vadd.f32 %v866_v12, %v852_v11 }
 0x25e   :  { %v870_v16 = vpack.c.bf16 %v867_v13, %v867_v13 }
 0x260   :  { %v877_v17 = vunpack.c.l.bf16 %v870_v16 }
 0x262   :  { %v880_v19 = vadd.f32 %v878_v15, %v877_v17 }
 0x264   :  { %v1320_v20 = vpack.c.bf16 %v880_v19, %v879_v18 }
 0x266   :  { %1321 = vst [vmem:[%s1700_s9] sm:$0xff] %v1320_v20  }
 0x267   :  { %889 = vsyncpa [#allocation3], 1 }

</bundles_post_ra>
